<compile_context>
chip_gen: v7x
topology: tpu7x:2x2x1
jax: 0.10.0
libtpu: 0.0.40
codegen_flags: <defaults>
</compile_context>

<pallas_src>
import functools

import jax
import jax.numpy as jnp
from jax.experimental import pallas as pl
from jax.experimental.pallas import tpu as pltpu

OBS_DIM = 16
ACT_DIM = 8
HIDDEN = (256, 512, 256, 256, 1)  # matches nn.Sequential in SoftQNetwork

_LANE = 128
_SUBLANE = 8


def _qnet_kernel(x_ref, a_ref,
                 w1x_ref, w1a_ref, b1_ref,
                 w2_ref, b2_ref,
                 w3_ref, b3_ref,
                 w4_ref, b4_ref,
                 w5_ref, b5_ref,
                 out_ref):
    """One batch tile: full 5-layer MLP (bf16 MXU operands, f32 accumulate)."""

    def dense(h_f32, w_ref, b_ref):
        return jnp.dot(h_f32.astype(jnp.bfloat16), w_ref[...],
                       preferred_element_type=jnp.float32) + b_ref[...]

    # Layer 1: fused concat — x @ W1[:obs] + a @ W1[obs:] + b1.
    h = (jnp.dot(x_ref[...].astype(jnp.bfloat16), w1x_ref[...],
                 preferred_element_type=jnp.float32)
         + jnp.dot(a_ref[...].astype(jnp.bfloat16), w1a_ref[...],
                   preferred_element_type=jnp.float32)
         + b1_ref[...])
    h = jnp.maximum(h, 0.0)

    h = jnp.maximum(dense(h, w2_ref, b2_ref), 0.0)
    h = jnp.maximum(dense(h, w3_ref, b3_ref), 0.0)
    h = jnp.maximum(dense(h, w4_ref, b4_ref), 0.0)

    # Final layer padded to 128 output lanes (cols 1..127 of w5/b5 are zeros)
    # so this is a full, unmasked lane-dense store.
    q = dense(h, w5_ref, b5_ref)
    out_ref[...] = q.astype(out_ref.dtype)


def init_params(key, obs_dim=OBS_DIM, act_dim=ACT_DIM, hidden=HIDDEN):
    """Deterministic init mimicking nn.Linear's U(-1/sqrt(fan_in), 1/sqrt(fan_in))."""
    dims = (obs_dim + act_dim,) + tuple(hidden)
    params = []
    for i in range(len(hidden)):
        fan_in, fan_out = dims[i], dims[i + 1]
        key, kw, kb = jax.random.split(key, 3)
        bound = 1.0 / jnp.sqrt(jnp.float32(fan_in))
        # weights stored as (in, out) so the kernel does h @ W (equivalent to
        # PyTorch's h @ W.T with W of shape (out, in)).
        w = jax.random.uniform(kw, (fan_in, fan_out), jnp.float32, -bound, bound)
        b = jax.random.uniform(kb, (1, fan_out), jnp.float32, -bound, bound)
        params.append((w, b))
    return params


def prepare_params(params, obs_dim=OBS_DIM, weight_dtype=jnp.bfloat16):
    """One-time parameter prep (outside the jitted forward).

    - splits W1 into an obs slab and an act slab (fused concat in-kernel),
    - pads W5/b5 out to 128 lane-dense output columns (zeros -> inert),
    - casts weight matrices to bf16; biases stay f32.
    """
    (w1, b1), (w2, b2), (w3, b3), (w4, b4), (w5, b5) = params
    w1x = jnp.asarray(w1[:obs_dim], weight_dtype)
    w1a = jnp.asarray(w1[obs_dim:], weight_dtype)
    w5p = jnp.asarray(jnp.pad(w5, ((0, 0), (0, _LANE - w5.shape[1]))), weight_dtype)
    b5p = jnp.pad(b5, ((0, 0), (0, _LANE - b5.shape[1]))).astype(jnp.float32)
    return (w1x, w1a, b1.astype(jnp.float32),
            jnp.asarray(w2, weight_dtype), b2.astype(jnp.float32),
            jnp.asarray(w3, weight_dtype), b3.astype(jnp.float32),
            jnp.asarray(w4, weight_dtype), b4.astype(jnp.float32),
            w5p, b5p)


def _round_up(v, m):
    return ((v + m - 1) // m) * m


def _choose_tile(batch, batch_tile):
    """Batch tile: big for MXU utilization, >=2 grid steps for v7x megacore."""
    tb = _round_up(min(int(batch_tile), max(batch, _SUBLANE)), _SUBLANE)
    if batch >= 2 * _SUBLANE:
        # keep at least two grid steps so v7x can shard "parallel" over 2 TCs
        tb = min(tb, _round_up((batch + 1) // 2, _SUBLANE))
    return max(tb, _SUBLANE)


@functools.partial(jax.jit, static_argnames=("batch_tile",))
def soft_q_forward(x, a, prepared, batch_tile=512):
    """x: (B, obs_dim) f32, a: (B, act_dim) f32  ->  q: (B, 1) f32."""
    B = x.shape[0]
    obs_dim, act_dim = x.shape[1], a.shape[1]

    tb = _choose_tile(B, batch_tile)
    Bp = _round_up(B, tb)
    x = x.astype(jnp.float32)
    a = a.astype(jnp.float32)
    if Bp != B:  # only pads when the batch is not already tile-aligned
        x = jnp.pad(x, ((0, Bp - B), (0, 0)))
        a = jnp.pad(a, ((0, Bp - B), (0, 0)))

    flat_params = list(prepared)

    # Weights/biases: full-array blocks with constant index_maps -> Pallas keeps
    # them resident in VMEM across grid steps (no per-step re-DMA).
    def _const_spec(arr):
        return pl.BlockSpec(arr.shape, lambda i: (0, 0))

    in_specs = [pl.BlockSpec((tb, obs_dim), lambda i: (i, 0)),
                pl.BlockSpec((tb, act_dim), lambda i: (i, 0))]
    in_specs += [_const_spec(p) for p in flat_params]

    # Advisory cost estimate so XLA can schedule surrounding ops around this call.
    layer_dims = ((obs_dim + act_dim, HIDDEN[0]),
                  (HIDDEN[0], HIDDEN[1]),
                  (HIDDEN[1], HIDDEN[2]),
                  (HIDDEN[2], HIDDEN[3]),
                  (HIDDEN[3], HIDDEN[4]))
    flops = 2 * Bp * sum(k * n for k, n in layer_dims)
    bytes_accessed = (x.size * 4 + a.size * 4 + Bp * _LANE * 4
                      + sum(int(p.size) * p.dtype.itemsize for p in flat_params))

    out = pl.pallas_call(
        _qnet_kernel,
        out_shape=jax.ShapeDtypeStruct((Bp, _LANE), jnp.float32),
        grid_spec=pltpu.PrefetchScalarGridSpec(
            num_scalar_prefetch=0,
            grid=(Bp // tb,),
            in_specs=in_specs,
            out_specs=pl.BlockSpec((tb, _LANE), lambda i: (i, 0)),
        ),
        compiler_params=pltpu.CompilerParams(
            dimension_semantics=("parallel",),
            vmem_limit_bytes=32 * 1024 * 1024,
        ),
        cost_estimate=pl.CostEstimate(flops=flops, transcendentals=0,
                                      bytes_accessed=bytes_accessed),
    )(x, a, *flat_params)

    return out[:B, :1]


def _reference_forward_f32(x, a, params):
    h = jnp.concatenate([x, a], axis=1).astype(jnp.float32)
    for i, (w, b) in enumerate(params):
        h = h @ w + b
        if i < len(params) - 1:
            h = jnp.maximum(h, 0.0)
    return h


def _reference_forward_bf16(x, a, params):
    """Emulates the kernel's bf16-operand / f32-accumulate matmuls."""
    h = jnp.concatenate([x, a], axis=1).astype(jnp.float32)
    for i, (w, b) in enumerate(params):
        h = jnp.dot(h.astype(jnp.bfloat16), w.astype(jnp.bfloat16),
                    preferred_element_type=jnp.float32) + b
        if i < len(params) - 1:
            h = jnp.maximum(h, 0.0)
    return h


if __name__ == "__main__":
    key = jax.random.PRNGKey(0)
    k_params, k_x, k_a = jax.random.split(key, 3)

    batch = 2
    params = init_params(k_params)
    prepared = prepare_params(params)   # one-time prep, outside the jitted forward

    x = jax.random.normal(k_x, (batch, OBS_DIM), jnp.float32)
    a = jax.random.normal(k_a, (batch, ACT_DIM), jnp.float32)

    q = jax.block_until_ready(soft_q_forward(x, a, prepared))
    assert q.shape == (batch, 1), q.shape
    q_bf = _reference_forward_bf16(x, a, params)
    q_f32 = _reference_forward_f32(x, a, params)
    assert jnp.allclose(q, q_bf, atol=1e-2, rtol=1e-2), (q, q_bf)
    assert jnp.allclose(q, q_f32, atol=5e-2, rtol=5e-2), (q, q_f32)

    # also exercise a larger, multi-tile batch (covers the >=2 grid-step path)
    k_x2, k_a2 = jax.random.split(k_x)
    x2 = jax.random.normal(k_x2, (1000, OBS_DIM), jnp.float32)
    a2 = jax.random.normal(k_a2, (1000, ACT_DIM), jnp.float32)
    q2 = jax.block_until_ready(soft_q_forward(x2, a2, prepared))
    assert q2.shape == (1000, 1), q2.shape
    q2_bf = _reference_forward_bf16(x2, a2, params)
    q2_f32 = _reference_forward_f32(x2, a2, params)
    assert jnp.allclose(q2, q2_bf, atol=1e-2, rtol=1e-2)
    assert jnp.allclose(q2, q2_f32, atol=5e-2, rtol=5e-2)

    print("KERNEL_OK")
</pallas_src>

<mosaic_0001>
module attributes {stable_mosaic.version = 11 : i64} {
  func.func @_qnet_kernel(%arg0: i32, %arg1: memref<8x16xf32, #tpu.memory_space<vmem>>, %arg2: memref<8x8xf32, #tpu.memory_space<vmem>>, %arg3: memref<16x256xbf16, #tpu.memory_space<vmem>>, %arg4: memref<8x256xbf16, #tpu.memory_space<vmem>>, %arg5: memref<1x256xf32, #tpu.memory_space<vmem>>, %arg6: memref<256x512xbf16, #tpu.memory_space<vmem>>, %arg7: memref<1x512xf32, #tpu.memory_space<vmem>>, %arg8: memref<512x256xbf16, #tpu.memory_space<vmem>>, %arg9: memref<1x256xf32, #tpu.memory_space<vmem>>, %arg10: memref<256x256xbf16, #tpu.memory_space<vmem>>, %arg11: memref<1x256xf32, #tpu.memory_space<vmem>>, %arg12: memref<256x128xbf16, #tpu.memory_space<vmem>>, %arg13: memref<1x128xf32, #tpu.memory_space<vmem>>, %arg14: memref<8x128xf32, #tpu.memory_space<vmem>>) attributes {dimension_semantics = [#tpu.dimension_semantics<parallel>], iteration_bounds = array<i64: 1>, scalar_prefetch = 0 : i64, scratch_operands = 0 : i64, tpu.core_type = #tpu.core_type<tc>, window_params = [{transform_indices = @transform_0, window_bounds = array<i64: 8, 16>}, {transform_indices = @transform_1, window_bounds = array<i64: 8, 8>}, {pipeline_mode = #tpu.pipeline_mode<synchronous>, transform_indices = @transform_2, window_bounds = array<i64: 16, 256>}, {pipeline_mode = #tpu.pipeline_mode<synchronous>, transform_indices = @transform_3, window_bounds = array<i64: 8, 256>}, {pipeline_mode = #tpu.pipeline_mode<synchronous>, transform_indices = @transform_4, window_bounds = array<i64: 1, 256>}, {pipeline_mode = #tpu.pipeline_mode<synchronous>, transform_indices = @transform_5, window_bounds = array<i64: 256, 512>}, {pipeline_mode = #tpu.pipeline_mode<synchronous>, transform_indices = @transform_6, window_bounds = array<i64: 1, 512>}, {pipeline_mode = #tpu.pipeline_mode<synchronous>, transform_indices = @transform_7, window_bounds = array<i64: 512, 256>}, {pipeline_mode = #tpu.pipeline_mode<synchronous>, transform_indices = @transform_8, window_bounds = array<i64: 1, 256>}, {pipeline_mode = #tpu.pipeline_mode<synchronous>, transform_indices = @transform_9, window_bounds = array<i64: 256, 256>}, {pipeline_mode = #tpu.pipeline_mode<synchronous>, transform_indices = @transform_10, window_bounds = array<i64: 1, 256>}, {pipeline_mode = #tpu.pipeline_mode<synchronous>, transform_indices = @transform_11, window_bounds = array<i64: 256, 128>}, {pipeline_mode = #tpu.pipeline_mode<synchronous>, transform_indices = @transform_12, window_bounds = array<i64: 1, 128>}, {transform_indices = @transform_13, window_bounds = array<i64: 8, 128>}]} {
    %c0 = arith.constant 0 : index
    %c0_0 = arith.constant 0 : index
    %0 = vector.load %arg1[%c0, %c0_0] : memref<8x16xf32, #tpu.memory_space<vmem>>, vector<8x16xf32>
    %1 = arith.truncf %0 : vector<8x16xf32> to vector<8x16xbf16>
    %c0_1 = arith.constant 0 : index
    %c0_2 = arith.constant 0 : index
    %2 = vector.load %arg3[%c0_1, %c0_2] : memref<16x256xbf16, #tpu.memory_space<vmem>>, vector<16x256xbf16>
    %cst = arith.constant dense<0.000000e+00> : vector<8x256xf32>
    %3 = tpu.matmul %1, %2, %cst {dimension_numbers = #tpu.dot_dimension_numbers<[1], [0], [0], [1], [0, 0, 1, 1], [], []>} : vector<8x16xbf16>, vector<16x256xbf16>, vector<8x256xf32> -> vector<8x256xf32>
    %c0_3 = arith.constant 0 : index
    %c0_4 = arith.constant 0 : index
    %4 = vector.load %arg2[%c0_3, %c0_4] : memref<8x8xf32, #tpu.memory_space<vmem>>, vector<8x8xf32>
    %5 = arith.truncf %4 : vector<8x8xf32> to vector<8x8xbf16>
    %c0_5 = arith.constant 0 : index
    %c0_6 = arith.constant 0 : index
    %6 = vector.load %arg4[%c0_5, %c0_6] : memref<8x256xbf16, #tpu.memory_space<vmem>>, vector<8x256xbf16>
    %cst_7 = arith.constant dense<0.000000e+00> : vector<8x256xf32>
    %7 = tpu.matmul %5, %6, %cst_7 {dimension_numbers = #tpu.dot_dimension_numbers<[1], [0], [0], [1], [0, 0, 1, 1], [], []>} : vector<8x8xbf16>, vector<8x256xbf16>, vector<8x256xf32> -> vector<8x256xf32>
    %8 = arith.addf %3, %7 : vector<8x256xf32>
    %c0_8 = arith.constant 0 : index
    %c0_9 = arith.constant 0 : index
    %9 = vector.load %arg5[%c0_8, %c0_9] : memref<1x256xf32, #tpu.memory_space<vmem>>, vector<1x256xf32>
    %10 = vector.broadcast %9 : vector<1x256xf32> to vector<8x256xf32>
    %11 = arith.addf %8, %10 : vector<8x256xf32>
    %cst_10 = arith.constant 0.000000e+00 : f32
    %12 = vector.broadcast %cst_10 : f32 to vector<8x256xf32>
    %13 = arith.maximumf %11, %12 : vector<8x256xf32>
    %14 = arith.truncf %13 : vector<8x256xf32> to vector<8x256xbf16>
    %c0_11 = arith.constant 0 : index
    %c0_12 = arith.constant 0 : index
    %15 = vector.load %arg6[%c0_11, %c0_12] : memref<256x512xbf16, #tpu.memory_space<vmem>>, vector<256x512xbf16>
    %cst_13 = arith.constant dense<0.000000e+00> : vector<8x512xf32>
    %16 = tpu.matmul %14, %15, %cst_13 {dimension_numbers = #tpu.dot_dimension_numbers<[1], [0], [0], [1], [0, 0, 1, 1], [], []>} : vector<8x256xbf16>, vector<256x512xbf16>, vector<8x512xf32> -> vector<8x512xf32>
    %c0_14 = arith.constant 0 : index
    %c0_15 = arith.constant 0 : index
    %17 = vector.load %arg7[%c0_14, %c0_15] : memref<1x512xf32, #tpu.memory_space<vmem>>, vector<1x512xf32>
    %18 = vector.broadcast %17 : vector<1x512xf32> to vector<8x512xf32>
    %19 = arith.addf %16, %18 : vector<8x512xf32>
    %cst_16 = arith.constant 0.000000e+00 : f32
    %20 = vector.broadcast %cst_16 : f32 to vector<8x512xf32>
    %21 = arith.maximumf %19, %20 : vector<8x512xf32>
    %22 = arith.truncf %21 : vector<8x512xf32> to vector<8x512xbf16>
    %c0_17 = arith.constant 0 : index
    %c0_18 = arith.constant 0 : index
    %23 = vector.load %arg8[%c0_17, %c0_18] : memref<512x256xbf16, #tpu.memory_space<vmem>>, vector<512x256xbf16>
    %cst_19 = arith.constant dense<0.000000e+00> : vector<8x256xf32>
    %24 = tpu.matmul %22, %23, %cst_19 {dimension_numbers = #tpu.dot_dimension_numbers<[1], [0], [0], [1], [0, 0, 1, 1], [], []>} : vector<8x512xbf16>, vector<512x256xbf16>, vector<8x256xf32> -> vector<8x256xf32>
    %c0_20 = arith.constant 0 : index
    %c0_21 = arith.constant 0 : index
    %25 = vector.load %arg9[%c0_20, %c0_21] : memref<1x256xf32, #tpu.memory_space<vmem>>, vector<1x256xf32>
    %26 = vector.broadcast %25 : vector<1x256xf32> to vector<8x256xf32>
    %27 = arith.addf %24, %26 : vector<8x256xf32>
    %cst_22 = arith.constant 0.000000e+00 : f32
    %28 = vector.broadcast %cst_22 : f32 to vector<8x256xf32>
    %29 = arith.maximumf %27, %28 : vector<8x256xf32>
    %30 = arith.truncf %29 : vector<8x256xf32> to vector<8x256xbf16>
    %c0_23 = arith.constant 0 : index
    %c0_24 = arith.constant 0 : index
    %31 = vector.load %arg10[%c0_23, %c0_24] : memref<256x256xbf16, #tpu.memory_space<vmem>>, vector<256x256xbf16>
    %cst_25 = arith.constant dense<0.000000e+00> : vector<8x256xf32>
    %32 = tpu.matmul %30, %31, %cst_25 {dimension_numbers = #tpu.dot_dimension_numbers<[1], [0], [0], [1], [0, 0, 1, 1], [], []>} : vector<8x256xbf16>, vector<256x256xbf16>, vector<8x256xf32> -> vector<8x256xf32>
    %c0_26 = arith.constant 0 : index
    %c0_27 = arith.constant 0 : index
    %33 = vector.load %arg11[%c0_26, %c0_27] : memref<1x256xf32, #tpu.memory_space<vmem>>, vector<1x256xf32>
    %34 = vector.broadcast %33 : vector<1x256xf32> to vector<8x256xf32>
    %35 = arith.addf %32, %34 : vector<8x256xf32>
    %cst_28 = arith.constant 0.000000e+00 : f32
    %36 = vector.broadcast %cst_28 : f32 to vector<8x256xf32>
    %37 = arith.maximumf %35, %36 : vector<8x256xf32>
    %38 = arith.truncf %37 : vector<8x256xf32> to vector<8x256xbf16>
    %c0_29 = arith.constant 0 : index
    %c0_30 = arith.constant 0 : index
    %39 = vector.load %arg12[%c0_29, %c0_30] : memref<256x128xbf16, #tpu.memory_space<vmem>>, vector<256x128xbf16>
    %cst_31 = arith.constant dense<0.000000e+00> : vector<8x128xf32>
    %40 = tpu.matmul %38, %39, %cst_31 {dimension_numbers = #tpu.dot_dimension_numbers<[1], [0], [0], [1], [0, 0, 1, 1], [], []>} : vector<8x256xbf16>, vector<256x128xbf16>, vector<8x128xf32> -> vector<8x128xf32>
    %c0_32 = arith.constant 0 : index
    %c0_33 = arith.constant 0 : index
    %41 = vector.load %arg13[%c0_32, %c0_33] : memref<1x128xf32, #tpu.memory_space<vmem>>, vector<1x128xf32>
    %42 = vector.broadcast %41 : vector<1x128xf32> to vector<8x128xf32>
    %43 = arith.addf %40, %42 : vector<8x128xf32>
    %c0_34 = arith.constant 0 : index
    %c0_35 = arith.constant 0 : index
    %44 = vector.load %arg14[%c0_34, %c0_35] : memref<8x128xf32, #tpu.memory_space<vmem>>, vector<8x128xf32>
    tpu.vector_store %arg14[%c0_34, %c0_35], %43 {strides = array<i32>} : memref<8x128xf32, #tpu.memory_space<vmem>>, vector<8x128xf32>,
    return
  }
  func.func @transform_0(%arg0: i32) -> (i32, i32) {
    %c0_i32 = arith.constant 0 : i32
    %c0_i32_0 = arith.constant 0 : i32
    return %arg0, %c0_i32 : i32, i32
  }
  func.func @transform_1(%arg0: i32) -> (i32, i32) {
    %c0_i32 = arith.constant 0 : i32
    %c0_i32_0 = arith.constant 0 : i32
    return %arg0, %c0_i32 : i32, i32
  }
  func.func @transform_2(%arg0: i32) -> (i32, i32) {
    %c0_i32 = arith.constant 0 : i32
    %c0_i32_0 = arith.constant 0 : i32
    %c0_i32_1 = arith.constant 0 : i32
    return %c0_i32, %c0_i32_0 : i32, i32
  }
  func.func @transform_3(%arg0: i32) -> (i32, i32) {
    %c0_i32 = arith.constant 0 : i32
    %c0_i32_0 = arith.constant 0 : i32
    %c0_i32_1 = arith.constant 0 : i32
    return %c0_i32, %c0_i32_0 : i32, i32
  }
  func.func @transform_4(%arg0: i32) -> (i32, i32) {
    %c0_i32 = arith.constant 0 : i32
    %c0_i32_0 = arith.constant 0 : i32
    %c0_i32_1 = arith.constant 0 : i32
    return %c0_i32, %c0_i32_0 : i32, i32
  }
  func.func @transform_5(%arg0: i32) -> (i32, i32) {
    %c0_i32 = arith.constant 0 : i32
    %c0_i32_0 = arith.constant 0 : i32
    %c0_i32_1 = arith.constant 0 : i32
    return %c0_i32, %c0_i32_0 : i32, i32
  }
  func.func @transform_6(%arg0: i32) -> (i32, i32) {
    %c0_i32 = arith.constant 0 : i32
    %c0_i32_0 = arith.constant 0 : i32
    %c0_i32_1 = arith.constant 0 : i32
    return %c0_i32, %c0_i32_0 : i32, i32
  }
  func.func @transform_7(%arg0: i32) -> (i32, i32) {
    %c0_i32 = arith.constant 0 : i32
    %c0_i32_0 = arith.constant 0 : i32
    %c0_i32_1 = arith.constant 0 : i32
    return %c0_i32, %c0_i32_0 : i32, i32
  }
  func.func @transform_8(%arg0: i32) -> (i32, i32) {
    %c0_i32 = arith.constant 0 : i32
    %c0_i32_0 = arith.constant 0 : i32
    %c0_i32_1 = arith.constant 0 : i32
    return %c0_i32, %c0_i32_0 : i32, i32
  }
  func.func @transform_9(%arg0: i32) -> (i32, i32) {
    %c0_i32 = arith.constant 0 : i32
    %c0_i32_0 = arith.constant 0 : i32
    %c0_i32_1 = arith.constant 0 : i32
    return %c0_i32, %c0_i32_0 : i32, i32
  }
  func.func @transform_10(%arg0: i32) -> (i32, i32) {
    %c0_i32 = arith.constant 0 : i32
    %c0_i32_0 = arith.constant 0 : i32
    %c0_i32_1 = arith.constant 0 : i32
    return %c0_i32, %c0_i32_0 : i32, i32
  }
  func.func @transform_11(%arg0: i32) -> (i32, i32) {
    %c0_i32 = arith.constant 0 : i32
    %c0_i32_0 = arith.constant 0 : i32
    %c0_i32_1 = arith.constant 0 : i32
    return %c0_i32, %c0_i32_0 : i32, i32
  }
  func.func @transform_12(%arg0: i32) -> (i32, i32) {
    %c0_i32 = arith.constant 0 : i32
    %c0_i32_0 = arith.constant 0 : i32
    %c0_i32_1 = arith.constant 0 : i32
    return %c0_i32, %c0_i32_0 : i32, i32
  }
  func.func @transform_13(%arg0: i32) -> (i32, i32) {
    %c0_i32 = arith.constant 0 : i32
    %c0_i32_0 = arith.constant 0 : i32
    return %arg0, %c0_i32 : i32, i32
  }
}

</mosaic_0001>

<bundles_post_ra>
// kernel: soft_q_forward.1
= control target key start
LH: loop header
LB: loop body
LE: loop exit
PB: predicated region body
PF: predicated region fallthrough
CT: control target
= control target key end

     0   :  { %18 = vsyncpa [#allocation3], 0  ;;  %s2427_s0 = inlined_call_operand.vmem [shape: f32[8,16], index: 0, kind: input, shape index: {}]   ;;  %s2428_s1 = inlined_call_operand.vmem [shape: f32[8,8], index: 1, kind: input, shape index: {}]   ;;  %s2429_s2 = inlined_call_operand.vmem [shape: bf16[16,256], index: 2, kind: input, shape index: {}]   ;;  %s2430_s3 = inlined_call_operand.vmem [shape: bf16[8,256], index: 3, kind: input, shape index: {}]   ;;  %s2431_s4 = inlined_call_operand.vmem [shape: f32[1,256], index: 4, kind: input, shape index: {}]   ;;  %s2432_s5 = inlined_call_operand.hbm [shape: bf16[256,512], index: 5, kind: input, shape index: {}]   ;;  %s2433_s6 = inlined_call_operand.vmem [shape: f32[1,512], index: 6, kind: input, shape index: {}]   ;;  %s2434_s7 = inlined_call_operand.hbm [shape: bf16[512,256], index: 7, kind: input, shape index: {}]   ;;  %s2435_s8 = inlined_call_operand.vmem [shape: f32[1,256], index: 8, kind: input, shape index: {}]   ;;  %s2436_s9 = inlined_call_operand.hbm [shape: bf16[256,256], index: 9, kind: input, shape index: {}]   ;;  %s2437_s10 = inlined_call_operand.vmem [shape: f32[1,256], index: 10, kind: input, shape index: {}]   ;;  %s2438_s11 = inlined_call_operand.hbm [shape: bf16[256,128], index: 11, kind: input, shape index: {}]   ;;  %s2439_s12 = inlined_call_operand.vmem [shape: f32[1,128], index: 12, kind: input, shape index: {}]   ;;  %s2440_s13 = inlined_call_operand.vmem [shape: f32[8,128], index: 13, kind: output, shape index: {}]  }
   0x1   :  { %19 = vsyncpa [#allocation5], 0 }
   0x2   :  { %20 = vsyncpa [#allocation8], 0  ;;  %s2225_s25 = smov [#allocation4]   ;;  %s2131_s29 = scalar_lea.hbm %s2434_s7, 8192 }
   0x3   :  { %s50_s26 = sshll.u32 %s2225_s25, 4  ;;  %p2132_p0 = scmp.ne.s32.totalorder %s2434_s7, %s2131_s29  ;;  %s51_s26 = int_to_ptr.vmem [resolvable:$true] %s50_s26 }
   0x4   :  { %p2135_p1 = scmp.lt.u32.totalorder %s2131_s29, %s2434_s7 }
   0x6   :  { %p2137_p2 = pnand %p2135_p1, %p2132_p0 }
   0x8   :  { %2140 = shalt.err (!%p2137_p2)
}
   0x9   :  { %s2141_s17 = scalar_lea.vmem %s51_s26, 8192  ;;  %p2146_p4 = scmp.lt.s32.totalorder %s51_s26, %s51_s26 }
   0xa   :  { %p2142_p3 = scmp.ne.s32.totalorder %s51_s26, %s2141_s17  ;;  %p2147_p5 = scmp.lt.s32.totalorder %s2141_s17, %s2141_s17 }
   0xc   :  { %p2148_p6 = por %p2147_p5, %p2146_p4 }
   0xe   :  { %p2149_p7 = pnand %p2148_p6, %p2142_p3 }
  0x10   :  { %2152 = shalt.err (!%p2149_p7)
}
  0x11   :  { %s2226_s18 = smov 128   ;;  %s2227_s19 = smov 8  }
  0x12   :  { %56 = dma.hbm_to_vmem [thread:$0]  %s2434_s7, 8192, %s51_s26, [#allocation5], %s2226_s18, %s2226_s18, %s2227_s19  }
  0x13   :  { %s2228_s22 = smov [#allocation2]   ;;  %s2153_s27 = scalar_lea.hbm %s2432_s5, 8192 }
  0x14   :  { %s36_s23 = sshll.u32 %s2228_s22, 4  ;;  %p2154_p8 = scmp.ne.s32.totalorder %s2432_s5, %s2153_s27  ;;  %s37_s23 = int_to_ptr.vmem [resolvable:$true] %s36_s23 }
  0x15   :  { %p2157_p9 = scmp.lt.u32.totalorder %s2153_s27, %s2432_s5 }
  0x17   :  { %p2159_p10 = pnand %p2157_p9, %p2154_p8 }
  0x19   :  { %2162 = shalt.err (!%p2159_p10)
}
  0x1a   :  { %s2163_s15 = scalar_lea.vmem %s37_s23, 8192  ;;  %p2168_p12 = scmp.lt.s32.totalorder %s37_s23, %s37_s23 }
  0x1b   :  { %p2164_p11 = scmp.ne.s32.totalorder %s37_s23, %s2163_s15  ;;  %p2169_p13 = scmp.lt.s32.totalorder %s2163_s15, %s2163_s15 }
  0x1d   :  { %p2170_p0 = por %p2169_p13, %p2168_p12 }
  0x1f   :  { %p2171_p1 = pnand %p2170_p0, %p2164_p11 }
  0x21   :  { %2174 = shalt.err (!%p2171_p1)
}
  0x22   :  { %s2229_s7 = smov 256   ;;  %s2230_s26 = smov 16  }
  0x23   :  { %42 = dma.hbm_to_vmem [thread:$0]  %s2432_s5, 8192, %s37_s23, [#allocation3], %s2229_s7, %s2229_s7, %s2230_s26  }
  0x24   :  { %s2231_s20 = smov [#allocation6]   ;;  %s2232_s22 = smov [#allocation7]  }
  0x25   :  { %s64_s21 = sshll.u32 %s2231_s20, 4  ;;  %s78_s24 = sshll.u32 %s2232_s22, 4  ;;  %s65_s21 = int_to_ptr.vmem [resolvable:$true] %s64_s21  ;;  %s2333_s24 = int_to_ptr.vmem [resolvable:$true] %s78_s24 }
  0x26   :  { %s2175_s28 = scalar_lea.hbm %s2436_s9, 4096 }
  0x27   :  { %p2176_p2 = scmp.ne.s32.totalorder %s2436_s9, %s2175_s28  ;;  %p2179_p3 = scmp.lt.u32.totalorder %s2175_s28, %s2436_s9 }
  0x29   :  { %p2181_p4 = pnand %p2179_p3, %p2176_p2 }
  0x2b   :  { %2184 = shalt.err (!%p2181_p4)
}
  0x2c   :  { %s2185_s5 = scalar_lea.vmem %s65_s21, 4096  ;;  %p2190_p6 = scmp.lt.s32.totalorder %s65_s21, %s65_s21 }
  0x2d   :  { %p2186_p5 = scmp.ne.s32.totalorder %s65_s21, %s2185_s5  ;;  %p2191_p7 = scmp.lt.s32.totalorder %s2185_s5, %s2185_s5 }
  0x2f   :  { %p2192_p8 = por %p2191_p7, %p2190_p6 }
  0x31   :  { %p2193_p9 = pnand %p2192_p8, %p2186_p5 }
  0x33   :  { %2196 = shalt.err (!%p2193_p9)
}
  0x34   :  { %70 = dma.hbm_to_vmem [thread:$0]  %s2436_s9, 4096, %s65_s21, [#allocation5], %s2226_s18, %s2226_s18, %s2227_s19  }
  0x35   :  { %s2197_s17 = scalar_lea.hbm %s2438_s11, 2048 }
  0x36   :  { %p2198_p10 = scmp.ne.s32.totalorder %s2438_s11, %s2197_s17  ;;  %p2201_p11 = scmp.lt.u32.totalorder %s2197_s17, %s2438_s11 }
  0x38   :  { %p2203_p12 = pnand %p2201_p11, %p2198_p10 }
  0x3a   :  { %2206 = shalt.err (!%p2203_p12)
}
  0x3b   :  { %s2207_s28 = scalar_lea.vmem %s2333_s24, 2048  ;;  %p2212_p0 = scmp.lt.s32.totalorder %s2333_s24, %s2333_s24 }
  0x3c   :  { %p2208_p13 = scmp.ne.s32.totalorder %s2333_s24, %s2207_s28  ;;  %p2213_p1 = scmp.lt.s32.totalorder %s2207_s28, %s2207_s28 }
  0x3e   :  { %p2214_p2 = por %p2213_p1, %p2212_p0 }
  0x40   :  { %p2215_p3 = pnand %p2214_p2, %p2208_p13 }
  0x42   :  { %2218 = shalt.err (!%p2215_p3)
}
  0x43   :  { %s2233_s9 = smov 64   ;;  %s2234_s18 = smov 4  }
  0x44   :  { %84 = dma.hbm_to_vmem [thread:$0]  %s2438_s11, 2048, %s2333_s24, [#allocation8], %s2233_s9, %s2233_s9, %s2234_s18  }
  0x45   :  { %2219 = dma.done.wait [#allocation3], 8192  }
  0x46   :  { %2220 = vsyncadd [#allocation3], 4294959104 }
  0x47   :  { %2221 = dma.done.wait [#allocation5], 12288  }
  0x48   :  { %2222 = vsyncadd [#allocation5], 4294955008 }
  0x49   :  { %2223 = dma.done.wait [#allocation8], 2048  }
  0x4a   :  { %2224 = vsyncadd [#allocation8], 4294965248  ;;  %v2235_v0 = vmov 0   ;;  %v106_v1 = vld [vmem:[%s2430_s3] sm:$0xff]  ;;  %vm116_vm0 = vcmask 1043456   ;;  %vm112_vm1 = vcmask 64512  }
  0x4b   :  { %155 = vmatprep.mubr.bf16.mxu1 %v2235_v0  ;;  %v104_v2 = vld [vmem:[%s2428_s1] sm:$0xff]  ;;  %v1648_v3 = vcombine.high %v106_v1, %v106_v1  ;;  %v1647_v4 = vcombine.low %v106_v1, %v106_v1  ;;  %v1875_v8 = vld [vmem:[#allocation2 + $0x4] ss:$16 sps:$4 sm:$0xff]   ;;  %v1880_v11 = vld [vmem:[#allocation2] ss:$16 sps:$4 sm:$0xff]   ;;  %vm174_vm2 = vcmask 130048  }
  0x4c   :  { %v1874_v5 = vld [vmem:[%s2429_s2 + $0x4] ss:$8 sps:$4 sm:$0xff]   ;;  %v105_v7 = vpack.c.bf16 %v104_v2, %v104_v2  ;;  %v1872_v9 = vld [vmem:[%s2429_s2] ss:$8 sps:$4 sm:$0xff]   ;;  %643 = vmatprep.subr.bf16.mxu0 %v1875_v8 }
  0x4d   :  { %1649 = vmatprep.subr.msk.bf16.mxu1 %vm116_vm0, %v1648_v3  ;;  %v118_v6 = vsel %vm116_vm0, %v1647_v4, 0  ;;  %v1879_v10 = vld [vmem:[#allocation2 + $0xc] ss:$16 sps:$4 sm:$0xff]   ;;  %v1881_v12 = vld [vmem:[#allocation2 + $0x24] ss:$16 sps:$4 sm:$0xff]   ;;  %644 = vmatpush1.bf16.msra.mxu0 %v1880_v11 }
  0x4e   :  { %124 = vmatpush1.bf16.msra.mxu1 %v118_v6  ;;  %v100_v13 = vld [vmem:[%s2427_s0] sm:$0xff]  ;;  %645 = vmatprep.subr.bf16.mxu0 %v1881_v12  ;;  %v1886_v14 = vld [vmem:[#allocation2 + $0x20] ss:$16 sps:$4 sm:$0xff]   ;;  %v1887_v15 = vld [vmem:[#allocation2 + $0x44] ss:$16 sps:$4 sm:$0xff]   ;;  %v221_v12 = vlaneseq }
  0x4f   :  { %178 = vmatprep.subr.bf16.mxu1 %v1874_v5  ;;  %v1892_v16 = vld [vmem:[#allocation2 + $0x40] ss:$16 sps:$4 sm:$0xff]   ;;  %v101_v17 = vpack.c.bf16 %v100_v13, %v100_v13  ;;  %v1893_v18 = vld [vmem:[#allocation2 + $0x64] ss:$16 sps:$4 sm:$0xff]   ;;  %v1877_v19 = vld [vmem:[#allocation2 + $0x8] ss:$16 sps:$4 sm:$0xff]  }
  0x50   :  { %v1885_v20 = vld [vmem:[#allocation2 + $0x2c] ss:$16 sps:$4 sm:$0xff]   ;;  %v1898_v21 = vld [vmem:[#allocation2 + $0x60] ss:$16 sps:$4 sm:$0xff]   ;;  %v1899_v22 = vld [vmem:[#allocation2 + $0x84] ss:$16 sps:$4 sm:$0xff]  }
  0x51   :  { %1650 = vmatmul.mubr.msk.bf16.vlgmr.msra.gmra.mrb[0].mxu1 %vm112_vm1, %v105_v7  ;;  %646 = vmatpush1.bf16.msra.mxu0 %v1886_v14  ;;  %v1883_v23 = vld [vmem:[#allocation2 + $0x28] ss:$16 sps:$4 sm:$0xff]   ;;  %v1891_v24 = vld [vmem:[#allocation2 + $0x4c] ss:$16 sps:$4 sm:$0xff]   ;;  %v1904_v25 = vld [vmem:[#allocation2 + $0x80] ss:$16 sps:$4 sm:$0xff]  }
  0x52   :  { %179 = vmatpush1.bf16.msra.mxu1 %v1872_v9  ;;  %210 = vmatprep.mubr.bf16.mxu1 %v2235_v0  ;;  %v1905_v26 = vld [vmem:[#allocation2 + $0xa4] ss:$16 sps:$4 sm:$0xff]   ;;  %v1889_v27 = vld [vmem:[#allocation2 + $0x48] ss:$16 sps:$4 sm:$0xff]   ;;  %v1897_v28 = vld [vmem:[#allocation2 + $0x6c] ss:$16 sps:$4 sm:$0xff]  }
  0x53   :  { %684 = vmatprep.subr.bf16.mxu1 %v1879_v10  ;;  %647 = vmatprep.subr.bf16.mxu0 %v1887_v15  ;;  %v1910_v29 = vld [vmem:[#allocation2 + $0xa0] ss:$16 sps:$4 sm:$0xff]   ;;  %v1911_v30 = vld [vmem:[#allocation2 + $0xc4] ss:$16 sps:$4 sm:$0xff]   ;;  %v1895_v31 = vld [vmem:[#allocation2 + $0x68] ss:$16 sps:$4 sm:$0xff]  }
  0x54   :  { %v1903_v32 = vld [vmem:[#allocation2 + $0x8c] ss:$16 sps:$4 sm:$0xff]   ;;  %v1916_v33 = vld [vmem:[#allocation2 + $0xc0] ss:$16 sps:$4 sm:$0xff]   ;;  %v1917_v34 = vld [vmem:[#allocation2 + $0xe4] ss:$16 sps:$4 sm:$0xff]  }
  0x55   :  { %648 = vmatpush1.bf16.msra.mxu0 %v1892_v16  ;;  %v1901_v35 = vld [vmem:[#allocation2 + $0x88] ss:$16 sps:$4 sm:$0xff]   ;;  %v1909_v36 = vld [vmem:[#allocation2 + $0xac] ss:$16 sps:$4 sm:$0xff]   ;;  %v1922_v37 = vld [vmem:[#allocation2 + $0xe0] ss:$16 sps:$4 sm:$0xff]  }
  0x56   :  { %649 = vmatprep.subr.bf16.mxu0 %v1893_v18  ;;  %v1907_v38 = vld [vmem:[#allocation2 + $0xa8] ss:$16 sps:$4 sm:$0xff]   ;;  %v1923_v39 = vld [vmem:[#allocation2 + $0x104] ss:$16 sps:$4 sm:$0xff]   ;;  %v1915_v40 = vld [vmem:[#allocation2 + $0xcc] ss:$16 sps:$4 sm:$0xff]  }
  0x57   :  { %v1928_v41 = vld [vmem:[#allocation2 + $0x100] ss:$16 sps:$4 sm:$0xff]   ;;  %v1929_v42 = vld [vmem:[#allocation2 + $0x124] ss:$16 sps:$4 sm:$0xff]   ;;  %v1913_v43 = vld [vmem:[#allocation2 + $0xc8] ss:$16 sps:$4 sm:$0xff]  }
  0x58   :  { %v1921_v44 = vld [vmem:[#allocation2 + $0xec] ss:$16 sps:$4 sm:$0xff]   ;;  %v1934_v45 = vld [vmem:[#allocation2 + $0x120] ss:$16 sps:$4 sm:$0xff]   ;;  %v1935_v46 = vld [vmem:[#allocation2 + $0x144] ss:$16 sps:$4 sm:$0xff]  }
  0x59   :  { %1653 = vmatmul.mubr.msk.bf16.vlgmr.msra.gmra.mrb[4].mxu1 %vm174_vm2, %v101_v17  ;;  %650 = vmatpush1.bf16.msra.mxu0 %v1898_v21  ;;  %v1919_v47 = vld [vmem:[#allocation2 + $0xe8] ss:$16 sps:$4 sm:$0xff]   ;;  %v1927_v48 = vld [vmem:[#allocation2 + $0x10c] ss:$16 sps:$4 sm:$0xff]   ;;  %v1940_v49 = vld [vmem:[#allocation2 + $0x140] ss:$16 sps:$4 sm:$0xff]  }
  0x5a   :  { %685 = vmatpush1.bf16.msra.mxu1 %v1877_v19  ;;  %651 = vmatprep.subr.bf16.mxu0 %v1899_v22  ;;  %v1941_v50 = vld [vmem:[#allocation2 + $0x164] ss:$16 sps:$4 sm:$0xff]   ;;  %v1925_v51 = vld [vmem:[#allocation2 + $0x108] ss:$16 sps:$4 sm:$0xff]   ;;  %v1933_v52 = vld [vmem:[#allocation2 + $0x12c] ss:$16 sps:$4 sm:$0xff]  }
  0x5b   :  { %686 = vmatprep.subr.bf16.mxu1 %v1885_v20  ;;  %v1931_v53 = vld [vmem:[#allocation2 + $0x128] ss:$16 sps:$4 sm:$0xff]   ;;  %v1939_v54 = vld [vmem:[#allocation2 + $0x14c] ss:$16 sps:$4 sm:$0xff]   ;;  %v1946_v58 = vld [vmem:[#allocation2 + $0x160] ss:$16 sps:$4 sm:$0xff]  }
  0x5c   :  { %v1937_v55 = vld [vmem:[#allocation2 + $0x148] ss:$16 sps:$4 sm:$0xff]   ;;  %v1945_v56 = vld [vmem:[#allocation2 + $0x16c] ss:$16 sps:$4 sm:$0xff]   ;;  %v1947_v59 = vld [vmem:[#allocation2 + $0x184] ss:$16 sps:$4 sm:$0xff]  }
  0x5d   :  { %652 = vmatpush1.bf16.msra.mxu0 %v1904_v25  ;;  %v1943_v57 = vld [vmem:[#allocation2 + $0x168] ss:$16 sps:$4 sm:$0xff]   ;;  %v1951_v60 = vld [vmem:[#allocation2 + $0x18c] ss:$16 sps:$4 sm:$0xff]   ;;  %v1952_v62 = vld [vmem:[#allocation2 + $0x180] ss:$16 sps:$4 sm:$0xff]  }
  0x5e   :  { %687 = vmatpush1.bf16.msra.mxu1 %v1883_v23  ;;  %653 = vmatprep.subr.bf16.mxu0 %v1905_v26  ;;  %v1949_v61 = vld [vmem:[#allocation2 + $0x188] ss:$16 sps:$4 sm:$0xff]   ;;  %v1953_v63 = vld [vmem:[#allocation2 + $0x1a4] ss:$16 sps:$4 sm:$0xff]   ;;  %v1957_v0 = vld [vmem:[#allocation2 + $0x1ac] ss:$16 sps:$4 sm:$0xff]  }
  0x5f   :  { %688 = vmatprep.subr.bf16.mxu1 %v1891_v24  ;;  %v1955_v1 = vld [vmem:[#allocation2 + $0x1a8] ss:$16 sps:$4 sm:$0xff]   ;;  %v1958_v2 = vld [vmem:[#allocation2 + $0x1a0] ss:$16 sps:$4 sm:$0xff]   ;;  %v1959_v3 = vld [vmem:[#allocation2 + $0x1c4] ss:$16 sps:$4 sm:$0xff]  }
  0x60   :  { %v1963_v4 = vld [vmem:[#allocation2 + $0x1cc] ss:$16 sps:$4 sm:$0xff]   ;;  %v1961_v5 = vld [vmem:[#allocation2 + $0x1c8] ss:$16 sps:$4 sm:$0xff]   ;;  %v1964_v6 = vld [vmem:[#allocation2 + $0x1c0] ss:$16 sps:$4 sm:$0xff]  }
  0x61   :  { %654 = vmatpush1.bf16.msra.mxu0 %v1910_v29  ;;  %v1965_v7 = vld [vmem:[#allocation2 + $0x1e4] ss:$16 sps:$4 sm:$0xff]   ;;  %v1969_v8 = vld [vmem:[#allocation2 + $0x1ec] ss:$16 sps:$4 sm:$0xff]   ;;  %v1967_v9 = vld [vmem:[#allocation2 + $0x1e8] ss:$16 sps:$4 sm:$0xff]  }
  0x62   :  { %689 = vmatpush1.bf16.msra.mxu1 %v1889_v27  ;;  %655 = vmatprep.subr.bf16.mxu0 %v1911_v30  ;;  %v1970_v10 = vld [vmem:[#allocation2 + $0x1e0] ss:$16 sps:$4 sm:$0xff]   ;;  %v1973_v11 = vld [vmem:[#allocation4 + $0x4] ss:$8 sps:$4 sm:$0xff]   ;;  %v2382_v13 = vshrl.u32 %v221_v12, 7 }
  0x63   :  { %690 = vmatprep.subr.bf16.mxu1 %v1897_v28  ;;  %v219_v19 = vld [vmem:[%s2431_s4] sm:$0x3] }
  0x64   :  { %v2385_v18 = vsub.s32 0, %v2382_v13  ;;  %v2391_v20 = vsub.s32 1, %v2382_v13  ;;  %v2079_v12 = vld [vmem:[#allocation6 + $0x40] ss:$8 sps:$4 sm:$0xff]  }
  0x65   :  { %656 = vmatpush1.bf16.msra.mxu0 %v1916_v33 }
  0x66   :  { %691 = vmatpush1.bf16.msra.mxu1 %v1895_v31  ;;  %657 = vmatprep.subr.bf16.mxu0 %v1917_v34  ;;  %v224_v21 = vrot.slane %v219_v19, %v2385_v18  ;;  %v228_v23 = vrot.slane %v219_v19, %v2391_v20  ;;  %v1971_v34 = vld [vmem:[#allocation4] ss:$8 sps:$4 sm:$0xff]   ;;  %v2090_v19 = vld [vmem:[#allocation6 + $0x74] ss:$8 sps:$4 sm:$0xff]  }
  0x67   :  { %692 = vmatprep.subr.bf16.mxu1 %v1903_v32 }
  0x69   :  { %658 = vmatpush1.bf16.msra.mxu0 %v1922_v37  ;;  %v1974_v37 = vld [vmem:[#allocation4 + $0x10] ss:$8 sps:$4 sm:$0xff]  }
  0x6a   :  { %693 = vmatpush1.bf16.msra.mxu1 %v1901_v35  ;;  %659 = vmatprep.subr.bf16.mxu0 %v1923_v39  ;;  %v1977_v39 = vld [vmem:[#allocation4 + $0x20] ss:$8 sps:$4 sm:$0xff]  }
  0x6b   :  { %694 = vmatprep.subr.bf16.mxu1 %v1909_v36  ;;  %v1976_v36 = vld [vmem:[#allocation4 + $0x14] ss:$8 sps:$4 sm:$0xff]  }
  0x6d   :  { %660 = vmatpush1.bf16.msra.mxu0 %v1928_v41  ;;  %v1980_v41 = vld [vmem:[#allocation4 + $0x30] ss:$8 sps:$4 sm:$0xff]  }
  0x6e   :  { %695 = vmatpush1.bf16.msra.mxu1 %v1907_v38  ;;  %661 = vmatprep.subr.bf16.mxu0 %v1929_v42  ;;  %v1979_v38 = vld [vmem:[#allocation4 + $0x24] ss:$8 sps:$4 sm:$0xff]  }
  0x6f   :  { %696 = vmatprep.subr.bf16.mxu1 %v1915_v40  ;;  %v1982_v40 = vld [vmem:[#allocation4 + $0x34] ss:$8 sps:$4 sm:$0xff]   ;;  %v1985_v42 = vld [vmem:[#allocation4 + $0x44] ss:$8 sps:$4 sm:$0xff]  }
  0x71   :  { %662 = vmatpush1.bf16.msra.mxu0 %v1934_v45  ;;  %v1986_v45 = vld [vmem:[#allocation4 + $0x50] ss:$8 sps:$4 sm:$0xff]  }
  0x72   :  { %697 = vmatpush1.bf16.msra.mxu1 %v1913_v43  ;;  %663 = vmatprep.subr.bf16.mxu0 %v1935_v46  ;;  %v1983_v43 = vld [vmem:[#allocation4 + $0x40] ss:$8 sps:$4 sm:$0xff]   ;;  %v1991_v46 = vld [vmem:[#allocation4 + $0x64] ss:$8 sps:$4 sm:$0xff]  }
  0x73   :  { %698 = vmatprep.subr.bf16.mxu1 %v1921_v44  ;;  %v1988_v44 = vld [vmem:[#allocation4 + $0x54] ss:$8 sps:$4 sm:$0xff]  }
  0x75   :  { %664 = vmatpush1.bf16.msra.mxu0 %v1940_v49  ;;  %v1992_v49 = vld [vmem:[#allocation4 + $0x70] ss:$8 sps:$4 sm:$0xff]  }
  0x76   :  { %699 = vmatpush1.bf16.msra.mxu1 %v1919_v47  ;;  %665 = vmatprep.subr.bf16.mxu0 %v1941_v50  ;;  %v1989_v47 = vld [vmem:[#allocation4 + $0x60] ss:$8 sps:$4 sm:$0xff]   ;;  %v1997_v50 = vld [vmem:[#allocation4 + $0x84] ss:$8 sps:$4 sm:$0xff]  }
  0x77   :  { %700 = vmatprep.subr.bf16.mxu1 %v1927_v48  ;;  %v1994_v48 = vld [vmem:[#allocation4 + $0x74] ss:$8 sps:$4 sm:$0xff]  }
  0x79   :  { %666 = vmatpush1.bf16.msra.mxu0 %v1946_v58  ;;  %v2009_v58 = vld [vmem:[#allocation4 + $0xc4] ss:$8 sps:$4 sm:$0xff]  }
  0x7a   :  { %701 = vmatpush1.bf16.msra.mxu1 %v1925_v51  ;;  %667 = vmatprep.subr.bf16.mxu0 %v1947_v59  ;;  %v1995_v51 = vld [vmem:[#allocation4 + $0x80] ss:$8 sps:$4 sm:$0xff]  }
  0x7b   :  { %702 = vmatprep.subr.bf16.mxu1 %v1933_v52  ;;  %v2000_v52 = vld [vmem:[#allocation4 + $0x94] ss:$8 sps:$4 sm:$0xff]   ;;  %v2007_v59 = vld [vmem:[#allocation4 + $0xc0] ss:$8 sps:$4 sm:$0xff]  }
  0x7d   :  { %668 = vmatpush1.bf16.msra.mxu0 %v1952_v62  ;;  %v2015_v62 = vld [vmem:[#allocation4 + $0xe4] ss:$8 sps:$4 sm:$0xff]  }
  0x7e   :  { %703 = vmatpush1.bf16.msra.mxu1 %v1931_v53  ;;  %669 = vmatprep.subr.bf16.mxu0 %v1953_v63  ;;  %v1998_v53 = vld [vmem:[#allocation4 + $0x90] ss:$8 sps:$4 sm:$0xff]   ;;  %v2013_v63 = vld [vmem:[#allocation4 + $0xe0] ss:$8 sps:$4 sm:$0xff]  }
  0x7f   :  { %704 = vmatprep.subr.bf16.mxu1 %v1939_v54  ;;  %v2003_v54 = vld [vmem:[#allocation4 + $0xa4] ss:$8 sps:$4 sm:$0xff]  }
  0x81   :  { %670 = vmatpush1.bf16.msra.mxu0 %v1958_v2  ;;  %v2021_v2 = vld [vmem:[#allocation4 + $0x104] ss:$8 sps:$4 sm:$0xff]  }
  0x82   :  { %705 = vmatpush1.bf16.msra.mxu1 %v1937_v55  ;;  %671 = vmatprep.subr.bf16.mxu0 %v1959_v3  ;;  %v2001_v55 = vld [vmem:[#allocation4 + $0xa0] ss:$8 sps:$4 sm:$0xff]  }
  0x83   :  { %706 = vmatprep.subr.bf16.mxu1 %v1945_v56  ;;  %v2006_v56 = vld [vmem:[#allocation4 + $0xb4] ss:$8 sps:$4 sm:$0xff]   ;;  %v2067_v3 = vld [vmem:[#allocation6] ss:$8 sps:$4 sm:$0xff]  }
  0x85   :  { %672 = vmatpush1.bf16.msra.mxu0 %v1964_v6  ;;  %v2070_v6 = vld [vmem:[#allocation6 + $0x10] ss:$8 sps:$4 sm:$0xff]  }
  0x86   :  { %707 = vmatpush1.bf16.msra.mxu1 %v1943_v57  ;;  %673 = vmatprep.subr.bf16.mxu0 %v1965_v7  ;;  %v2004_v57 = vld [vmem:[#allocation4 + $0xb0] ss:$8 sps:$4 sm:$0xff]   ;;  %v2075_v7 = vld [vmem:[#allocation6 + $0x24] ss:$8 sps:$4 sm:$0xff]  }
  0x87   :  { %708 = vmatprep.subr.bf16.mxu1 %v1951_v60  ;;  %v2012_v60 = vld [vmem:[#allocation4 + $0xd4] ss:$8 sps:$4 sm:$0xff]  }
  0x89   :  { %674 = vmatpush1.bf16.msra.mxu0 %v1970_v10  ;;  %v2076_v10 = vld [vmem:[#allocation6 + $0x30] ss:$8 sps:$4 sm:$0xff]  }
  0x8a   :  { %709 = vmatpush1.bf16.msra.mxu1 %v1949_v61  ;;  %1129 = vmatprep.subr.bf16.mxu0 %v1973_v11  ;;  %v2010_v61 = vld [vmem:[#allocation4 + $0xd0] ss:$8 sps:$4 sm:$0xff]   ;;  %v2081_v11 = vld [vmem:[#allocation6 + $0x44] ss:$8 sps:$4 sm:$0xff]  }
  0x8b   :  { %710 = vmatprep.subr.bf16.mxu1 %v1957_v0  ;;  %v2018_v0 = vld [vmem:[#allocation4 + $0xf4] ss:$8 sps:$4 sm:$0xff]  }
  0x8e   :  { %711 = vmatpush1.bf16.msra.mxu1 %v1955_v1  ;;  %v2016_v1 = vld [vmem:[#allocation4 + $0xf0] ss:$8 sps:$4 sm:$0xff]  }
  0x8f   :  { %712 = vmatprep.subr.bf16.mxu1 %v1963_v4  ;;  %v2069_v4 = vld [vmem:[#allocation6 + $0x4] ss:$8 sps:$4 sm:$0xff]  }
  0x92   :  { %713 = vmatpush1.bf16.msra.mxu1 %v1961_v5  ;;  %v2072_v5 = vld [vmem:[#allocation6 + $0x14] ss:$8 sps:$4 sm:$0xff]  }
  0x93   :  { %714 = vmatprep.subr.bf16.mxu1 %v1969_v8  ;;  %v2073_v8 = vld [vmem:[#allocation6 + $0x20] ss:$8 sps:$4 sm:$0xff]  }
  0x96   :  { %715 = vmatpush1.bf16.msra.mxu1 %v1967_v9  ;;  %v2078_v9 = vld [vmem:[#allocation6 + $0x34] ss:$8 sps:$4 sm:$0xff]  }
  0x97   :  { %1419 = vmatprep.subr.bf16.mxu1 %v2069_v4  ;;  %v2037_v4 = vld [vmem:[#allocation4 + $0x160] ss:$8 sps:$4 sm:$0xff]  }
 0x124   :  { %v157_v14 = vpop.f32.mrb[0].mxu1 }
 0x125   :  { %v159_v15 = vpop.f32.mrb[1].mxu1 }
 0x126   :  { %v161_v16 = vpop.f32.mrb[2].mxu1 }
 0x127   :  { %v162_v17 = vpop.f32.mrb[3].mxu1  ;;  %v2087_v16 = vld [vmem:[#allocation6 + $0x64] ss:$8 sps:$4 sm:$0xff]  }
 0x128   :  { %v2085_v17 = vld [vmem:[#allocation6 + $0x60] ss:$8 sps:$4 sm:$0xff]  }
 0x12c   :  { %v212_v22 = vpop.f32.mrb[4].mxu1 }
 0x12d   :  { %v213_v24 = vadd.f32 %v212_v22, %v157_v14  ;;  %v214_v25 = vpop.f32.mrb[5].mxu1  ;;  %v2084_v14 = vld [vmem:[#allocation6 + $0x54] ss:$8 sps:$4 sm:$0xff]   ;;  %v2093_v22 = vld [vmem:[#allocation6 + $0x84] ss:$8 sps:$4 sm:$0xff]  }
 0x12e   :  { %v215_v26 = vadd.f32 %v214_v25, %v159_v15  ;;  %v216_v27 = vpop.f32.mrb[6].mxu1  ;;  %v2082_v15 = vld [vmem:[#allocation6 + $0x50] ss:$8 sps:$4 sm:$0xff]  }
 0x12f   :  { %v231_v28 = vadd.f32 %v224_v21, %v213_v24  ;;  %v217_v29 = vpop.f32.mrb[7].mxu1  ;;  %v2088_v21 = vld [vmem:[#allocation6 + $0x70] ss:$8 sps:$4 sm:$0xff]   ;;  %v2096_v24 = vld [vmem:[#allocation6 + $0x94] ss:$8 sps:$4 sm:$0xff]  }
 0x130   :  { %v232_v30 = vadd.f32 %v228_v23, %v215_v26  ;;  %v2091_v23 = vld [vmem:[#allocation6 + $0x80] ss:$8 sps:$4 sm:$0xff]   ;;  %v2094_v25 = vld [vmem:[#allocation6 + $0x90] ss:$8 sps:$4 sm:$0xff]   ;;  %v2099_v26 = vld [vmem:[#allocation6 + $0xa4] ss:$8 sps:$4 sm:$0xff]  }
 0x131   :  { %v233_v31 = vmax.f32 %v231_v28, 0.0  ;;  %v2097_v27 = vld [vmem:[#allocation6 + $0xa0] ss:$8 sps:$4 sm:$0xff]   ;;  %v2102_v28 = vld [vmem:[#allocation6 + $0xb4] ss:$8 sps:$4 sm:$0xff]  }
 0x132   :  { %v234_v32 = vmax.f32 %v232_v30, 0.0  ;;  %v2100_v29 = vld [vmem:[#allocation6 + $0xb0] ss:$8 sps:$4 sm:$0xff]   ;;  %v2105_v30 = vld [vmem:[#allocation6 + $0xc4] ss:$8 sps:$4 sm:$0xff]  }
 0x133   :  { %v235_v35 = vpack.c.bf16 %v233_v31, %v233_v31  ;;  %v2103_v31 = vld [vmem:[#allocation6 + $0xc0] ss:$8 sps:$4 sm:$0xff]  }
 0x134   :  { %v236_v33 = vpack.c.bf16 %v234_v32, %v234_v32  ;;  %v2108_v32 = vld [vmem:[#allocation6 + $0xd4] ss:$8 sps:$4 sm:$0xff]  }
 0x136   :  { %675 = vmatprep.mubr.bf16.mxu0 %v236_v33  ;;  %716 = vmatprep.mubr.bf16.mxu1 %v236_v33  ;;  %v2398_v33 = vld [vmem:[%s2433_s6] sm:$0xf] }
 0x137   :  { %676 = vmatmul.mubr.bf16.vlgmr.msra.gmra.mrb[0].mxu0 %v235_v35  ;;  %717 = vmatmul.mubr.bf16.vlgmr.msra.gmra.mrb[8].mxu1 %v235_v35  ;;  %v2106_v35 = vld [vmem:[#allocation6 + $0xd0] ss:$8 sps:$4 sm:$0xff]  }
 0x138   :  { %1130 = vmatpush1.bf16.msra.mxu0 %v1971_v34  ;;  %1420 = vmatpush1.bf16.msra.mxu1 %v2067_v3  ;;  %v317_v34 = vsub.s32 3, %v2382_v13  ;;  %v2039_v3 = vld [vmem:[#allocation4 + $0x164] ss:$8 sps:$4 sm:$0xff]  }
 0x139   :  { %1131 = vmatprep.subr.bf16.mxu0 %v1976_v36  ;;  %1421 = vmatprep.subr.bf16.mxu1 %v2072_v5  ;;  %v306_v36 = vrot.slane %v2398_v33, %v2385_v18  ;;  %v2042_v5 = vld [vmem:[#allocation4 + $0x174] ss:$8 sps:$4 sm:$0xff]  }
 0x13c   :  { %1132 = vmatpush1.bf16.msra.mxu0 %v1974_v37  ;;  %1422 = vmatpush1.bf16.msra.mxu1 %v2070_v6  ;;  %v310_v37 = vrot.slane %v2398_v33, %v2391_v20  ;;  %v2040_v6 = vld [vmem:[#allocation4 + $0x170] ss:$8 sps:$4 sm:$0xff]  }
 0x13d   :  { %1133 = vmatprep.subr.bf16.mxu0 %v1979_v38  ;;  %1423 = vmatprep.subr.bf16.mxu1 %v2075_v7  ;;  %v318_v38 = vrot.slane %v2398_v33, %v317_v34  ;;  %v2045_v7 = vld [vmem:[#allocation4 + $0x184] ss:$8 sps:$4 sm:$0xff]  }
 0x13e   :  { %v2115_v34 = vld [vmem:[#allocation7 + $0x40] sm:$0xff]  }
 0x140   :  { %1134 = vmatpush1.bf16.msra.mxu0 %v1977_v39  ;;  %1424 = vmatpush1.bf16.msra.mxu1 %v2073_v8  ;;  %v2043_v8 = vld [vmem:[#allocation4 + $0x180] ss:$8 sps:$4 sm:$0xff]  }
 0x141   :  { %1135 = vmatprep.subr.bf16.mxu0 %v1982_v40  ;;  %1425 = vmatprep.subr.bf16.mxu1 %v2078_v9  ;;  %v2048_v9 = vld [vmem:[#allocation4 + $0x194] ss:$8 sps:$4 sm:$0xff]  }
 0x144   :  { %1136 = vmatpush1.bf16.msra.mxu0 %v1980_v41  ;;  %1426 = vmatpush1.bf16.msra.mxu1 %v2076_v10  ;;  %v2046_v10 = vld [vmem:[#allocation4 + $0x190] ss:$8 sps:$4 sm:$0xff]  }
 0x145   :  { %1137 = vmatprep.subr.bf16.mxu0 %v1985_v42  ;;  %1427 = vmatprep.subr.bf16.mxu1 %v2081_v11  ;;  %v2051_v11 = vld [vmem:[#allocation4 + $0x1a4] ss:$8 sps:$4 sm:$0xff]  }
 0x148   :  { %1138 = vmatpush1.bf16.msra.mxu0 %v1983_v43  ;;  %1428 = vmatpush1.bf16.msra.mxu1 %v2079_v12  ;;  %v2049_v12 = vld [vmem:[#allocation4 + $0x1a0] ss:$8 sps:$4 sm:$0xff]  }
 0x149   :  { %1139 = vmatprep.subr.bf16.mxu0 %v1988_v44  ;;  %1429 = vmatprep.subr.bf16.mxu1 %v2084_v14  ;;  %v2054_v14 = vld [vmem:[#allocation4 + $0x1b4] ss:$8 sps:$4 sm:$0xff]  }
 0x14c   :  { %1140 = vmatpush1.bf16.msra.mxu0 %v1986_v45  ;;  %1430 = vmatpush1.bf16.msra.mxu1 %v2082_v15  ;;  %v2052_v15 = vld [vmem:[#allocation4 + $0x1b0] ss:$8 sps:$4 sm:$0xff]  }
 0x14d   :  { %1141 = vmatprep.subr.bf16.mxu0 %v1991_v46  ;;  %1431 = vmatprep.subr.bf16.mxu1 %v2087_v16  ;;  %v2057_v16 = vld [vmem:[#allocation4 + $0x1c4] ss:$8 sps:$4 sm:$0xff]  }
 0x150   :  { %1142 = vmatpush1.bf16.msra.mxu0 %v1989_v47  ;;  %1432 = vmatpush1.bf16.msra.mxu1 %v2085_v17  ;;  %v2055_v17 = vld [vmem:[#allocation4 + $0x1c0] ss:$8 sps:$4 sm:$0xff]  }
 0x151   :  { %1143 = vmatprep.subr.bf16.mxu0 %v1994_v48  ;;  %1433 = vmatprep.subr.bf16.mxu1 %v2090_v19  ;;  %v313_v19 = vsub.s32 2, %v2382_v13 }
 0x154   :  { %1144 = vmatpush1.bf16.msra.mxu0 %v1992_v49  ;;  %1434 = vmatpush1.bf16.msra.mxu1 %v2088_v21  ;;  %v2060_v21 = vld [vmem:[#allocation4 + $0x1d4] ss:$8 sps:$4 sm:$0xff]  }
 0x155   :  { %1145 = vmatprep.subr.bf16.mxu0 %v1997_v50  ;;  %1435 = vmatprep.subr.bf16.mxu1 %v2093_v22  ;;  %v2058_v22 = vld [vmem:[#allocation4 + $0x1d0] ss:$8 sps:$4 sm:$0xff]  }
 0x158   :  { %1146 = vmatpush1.bf16.msra.mxu0 %v1995_v51  ;;  %1436 = vmatpush1.bf16.msra.mxu1 %v2091_v23  ;;  %v314_v23 = vrot.slane %v2398_v33, %v313_v19  ;;  %v2112_v33 = vld [vmem:[#allocation6 + $0xf0] ss:$8 sps:$4 sm:$0xff]  }
 0x159   :  { %1147 = vmatprep.subr.bf16.mxu0 %v2000_v52  ;;  %1437 = vmatprep.subr.bf16.mxu1 %v2096_v24  ;;  %v2063_v24 = vld [vmem:[#allocation4 + $0x1e4] ss:$8 sps:$4 sm:$0xff]  }
 0x15c   :  { %1148 = vmatpush1.bf16.msra.mxu0 %v1998_v53  ;;  %1438 = vmatpush1.bf16.msra.mxu1 %v2094_v25  ;;  %v2061_v25 = vld [vmem:[#allocation4 + $0x1e0] ss:$8 sps:$4 sm:$0xff]  }
 0x15d   :  { %1149 = vmatprep.subr.bf16.mxu0 %v2003_v54  ;;  %1439 = vmatprep.subr.bf16.mxu1 %v2099_v26  ;;  %v2019_v54 = vld [vmem:[#allocation4 + $0x100] ss:$8 sps:$4 sm:$0xff]  }
 0x160   :  { %1150 = vmatpush1.bf16.msra.mxu0 %v2001_v55  ;;  %1440 = vmatpush1.bf16.msra.mxu1 %v2097_v27  ;;  %v2066_v27 = vld [vmem:[#allocation4 + $0x1f4] ss:$8 sps:$4 sm:$0xff]  }
 0x161   :  { %1151 = vmatprep.subr.bf16.mxu0 %v2006_v56  ;;  %1441 = vmatprep.subr.bf16.mxu1 %v2102_v28  ;;  %v2024_v56 = vld [vmem:[#allocation4 + $0x114] ss:$8 sps:$4 sm:$0xff]   ;;  %v2064_v28 = vld [vmem:[#allocation4 + $0x1f0] ss:$8 sps:$4 sm:$0xff]  }
 0x164   :  { %1152 = vmatpush1.bf16.msra.mxu0 %v2004_v57  ;;  %1442 = vmatpush1.bf16.msra.mxu1 %v2100_v29 }
 0x165   :  { %1153 = vmatprep.subr.bf16.mxu0 %v2009_v58  ;;  %1443 = vmatprep.subr.bf16.mxu1 %v2105_v30  ;;  %v2022_v58 = vld [vmem:[#allocation4 + $0x110] ss:$8 sps:$4 sm:$0xff]   ;;  %v2111_v30 = vld [vmem:[#allocation6 + $0xe4] ss:$8 sps:$4 sm:$0xff]  }
 0x168   :  { %1154 = vmatpush1.bf16.msra.mxu0 %v2007_v59  ;;  %1444 = vmatpush1.bf16.msra.mxu1 %v2103_v31  ;;  %v2027_v59 = vld [vmem:[#allocation4 + $0x124] ss:$8 sps:$4 sm:$0xff]   ;;  %v2109_v31 = vld [vmem:[#allocation6 + $0xe0] ss:$8 sps:$4 sm:$0xff]  }
 0x169   :  { %1155 = vmatprep.subr.bf16.mxu0 %v2012_v60  ;;  %1445 = vmatprep.subr.bf16.mxu1 %v2108_v32  ;;  %v2025_v60 = vld [vmem:[#allocation4 + $0x120] ss:$8 sps:$4 sm:$0xff]   ;;  %v2114_v32 = vld [vmem:[#allocation6 + $0xf4] ss:$8 sps:$4 sm:$0xff]  }
 0x16c   :  { %1156 = vmatpush1.bf16.msra.mxu0 %v2010_v61  ;;  %1446 = vmatpush1.bf16.msra.mxu1 %v2106_v35  ;;  %v2030_v61 = vld [vmem:[#allocation4 + $0x134] ss:$8 sps:$4 sm:$0xff]   ;;  %v797_v35 = vld [vmem:[%s2435_s8] sm:$0x3] }
 0x16d   :  { %1157 = vmatprep.subr.bf16.mxu0 %v2015_v62  ;;  %v2028_v62 = vld [vmem:[#allocation4 + $0x130] ss:$8 sps:$4 sm:$0xff]   ;;  %1447 = vmatprep.subr.bf16.mxu1 %v2111_v30 }
 0x170   :  { %1158 = vmatpush1.bf16.msra.mxu0 %v2013_v63  ;;  %v2033_v63 = vld [vmem:[#allocation4 + $0x144] ss:$8 sps:$4 sm:$0xff]   ;;  %1448 = vmatpush1.bf16.msra.mxu1 %v2109_v31 }
 0x171   :  { %1159 = vmatprep.subr.bf16.mxu0 %v2018_v0  ;;  %v2031_v0 = vld [vmem:[#allocation4 + $0x140] ss:$8 sps:$4 sm:$0xff]   ;;  %1449 = vmatprep.subr.bf16.mxu1 %v2114_v32 }
 0x174   :  { %1160 = vmatpush1.bf16.msra.mxu0 %v2016_v1  ;;  %v2036_v1 = vld [vmem:[#allocation4 + $0x154] ss:$8 sps:$4 sm:$0xff]   ;;  %1450 = vmatpush1.bf16.msra.mxu1 %v2112_v33 }
 0x175   :  { %1170 = vmatprep.subr.bf16.mxu0 %v2021_v2  ;;  %v2034_v2 = vld [vmem:[#allocation4 + $0x150] ss:$8 sps:$4 sm:$0xff]   ;;  %1831 = vmatprep.subr.bf16.mxu1 %v2115_v34 }
 0x20a   :  { %v677_v39 = vpop.f32.mrb[0].mxu0  ;;  %v2406_v40 = vpop.f32.mrb[8].mxu1 }
 0x20b   :  { %v678_v41 = vadd.f32 %v677_v39, %v306_v36  ;;  %v679_v42 = vpop.f32.mrb[1].mxu0  ;;  %v720_v43 = vpop.f32.mrb[9].mxu1  ;;  %v719_v26 = vadd.f32 %v2406_v40, %v314_v23  ;;  %v802_v36 = vrot.slane %v797_v35, %v2385_v18 }
 0x20c   :  { %v680_v44 = vadd.f32 %v679_v42, %v310_v37  ;;  %v721_v45 = vadd.f32 %v720_v43, %v318_v38  ;;  %v681_v46 = vpop.f32.mrb[2].mxu0  ;;  %v722_v47 = vpop.f32.mrb[10].mxu1  ;;  %v806_v37 = vrot.slane %v797_v35, %v2391_v20 }
 0x20d   :  { %v725_v48 = vmax.f32 %v678_v41, 0.0  ;;  %v682_v49 = vpop.f32.mrb[3].mxu0  ;;  %v723_v50 = vpop.f32.mrb[11].mxu1  ;;  %v727_v29 = vmax.f32 %v719_v26, 0.0  ;;  %v2116_v47 = vld [vmem:[#allocation7] sm:$0xff]  }
 0x20e   :  { %v726_v51 = vmax.f32 %v680_v44, 0.0  ;;  %v728_v52 = vmax.f32 %v721_v45, 0.0  ;;  %v2117_v49 = vld [vmem:[#allocation7 + $0x48] sm:$0xff]  }
 0x20f   :  { %v729_v55 = vpack.c.bf16 %v725_v48, %v725_v48  ;;  %v731_v13 = vpack.c.bf16 %v727_v29, %v727_v29  ;;  %v2118_v50 = vld [vmem:[#allocation7 + $0x8] sm:$0xff]  }
 0x210   :  { %v730_v53 = vpack.c.bf16 %v726_v51, %v726_v51  ;;  %v732_v57 = vpack.c.bf16 %v728_v52, %v728_v52  ;;  %v2119_v51 = vld [vmem:[#allocation7 + $0x50] sm:$0xff]  }
 0x211   :  { %v2120_v52 = vld [vmem:[#allocation7 + $0x10] sm:$0xff]  }
 0x212   :  { %1161 = vmatprep.mubr.bf16.mxu0 %v730_v53  ;;  %v2121_v53 = vld [vmem:[#allocation7 + $0x58] sm:$0xff]  }
 0x213   :  { %1162 = vmatmul.mubr.bf16.vlgmr.msra.gmra.mrb[4].mxu0 %v729_v55  ;;  %v2123_v55 = vld [vmem:[#allocation7 + $0x60] sm:$0xff]  }
 0x214   :  { %1171 = vmatpush1.bf16.msra.mxu0 %v2019_v54  ;;  %1202 = vmatprep.mubr.bf16.mxu0 %v732_v57  ;;  %v2122_v54 = vld [vmem:[#allocation7 + $0x18] sm:$0xff]   ;;  %v2125_v57 = vld [vmem:[#allocation7 + $0x68] sm:$0xff]  }
 0x215   :  { %1172 = vmatprep.subr.bf16.mxu0 %v2024_v56  ;;  %v2124_v56 = vld [vmem:[#allocation7 + $0x20] sm:$0xff]  }
 0x218   :  { %1173 = vmatpush1.bf16.msra.mxu0 %v2022_v58  ;;  %v2126_v58 = vld [vmem:[#allocation7 + $0x28] sm:$0xff]  }
 0x219   :  { %1174 = vmatprep.subr.bf16.mxu0 %v2027_v59  ;;  %v2127_v59 = vld [vmem:[#allocation7 + $0x70] sm:$0xff]  }
 0x21c   :  { %1175 = vmatpush1.bf16.msra.mxu0 %v2025_v60  ;;  %v2128_v60 = vld [vmem:[#allocation7 + $0x30] sm:$0xff]  }
 0x21d   :  { %1176 = vmatprep.subr.bf16.mxu0 %v2030_v61  ;;  %v2129_v61 = vld [vmem:[#allocation7 + $0x78] sm:$0xff]  }
 0x220   :  { %1177 = vmatpush1.bf16.msra.mxu0 %v2028_v62  ;;  %v2130_v62 = vld [vmem:[#allocation7 + $0x38] sm:$0xff]  }
 0x221   :  { %1178 = vmatprep.subr.bf16.mxu0 %v2033_v63  ;;  %v1247_v63 = vld [vmem:[%s2437_s10] sm:$0x3] }
 0x224   :  { %1179 = vmatpush1.bf16.msra.mxu0 %v2031_v0  ;;  %v1252_v0 = vrot.slane %v1247_v63, %v2385_v18 }
 0x225   :  { %1180 = vmatprep.subr.bf16.mxu0 %v2036_v1  ;;  %v1256_v1 = vrot.slane %v1247_v63, %v2391_v20 }
 0x228   :  { %1181 = vmatpush1.bf16.msra.mxu0 %v2034_v2 }
 0x229   :  { %1182 = vmatprep.subr.bf16.mxu0 %v2039_v3 }
 0x22c   :  { %1183 = vmatpush1.bf16.msra.mxu0 %v2037_v4 }
 0x22d   :  { %1184 = vmatprep.subr.bf16.mxu0 %v2042_v5 }
 0x230   :  { %1185 = vmatpush1.bf16.msra.mxu0 %v2040_v6 }
 0x231   :  { %1186 = vmatprep.subr.bf16.mxu0 %v2045_v7 }
 0x234   :  { %1187 = vmatpush1.bf16.msra.mxu0 %v2043_v8 }
 0x235   :  { %1188 = vmatprep.subr.bf16.mxu0 %v2048_v9 }
 0x238   :  { %1189 = vmatpush1.bf16.msra.mxu0 %v2046_v10 }
 0x239   :  { %1190 = vmatprep.subr.bf16.mxu0 %v2051_v11 }
 0x23c   :  { %1191 = vmatpush1.bf16.msra.mxu0 %v2049_v12 }
 0x23d   :  { %1192 = vmatprep.subr.bf16.mxu0 %v2054_v14  ;;  %v1814_v14 = vld [vmem:[%s2439_s12] ss:$0 sm:$0xff] }
 0x240   :  { %1193 = vmatpush1.bf16.msra.mxu0 %v2052_v15 }
 0x241   :  { %1194 = vmatprep.subr.bf16.mxu0 %v2057_v16 }
 0x244   :  { %1195 = vmatpush1.bf16.msra.mxu0 %v2055_v17 }
 0x245   :  { %1196 = vmatprep.subr.bf16.mxu0 %v2060_v21 }
 0x248   :  { %1197 = vmatpush1.bf16.msra.mxu0 %v2058_v22 }
 0x249   :  { %1198 = vmatprep.subr.bf16.mxu0 %v2063_v24 }
 0x24c   :  { %1199 = vmatpush1.bf16.msra.mxu0 %v2061_v25 }
 0x24d   :  { %1200 = vmatprep.subr.bf16.mxu0 %v2066_v27 }
 0x250   :  { %1201 = vmatpush1.bf16.msra.mxu0 %v2064_v28 }
 0x253   :  { %1203 = vmatmul.mubr.bf16.vlgmr.msra.gmra.mrb[4].mxu0 %v731_v13 }
 0x326   :  { %v1204_v38 = vpop.f32.mrb[4].mxu0 }
 0x327   :  { %v1853_v39 = vadd.f32 %v1204_v38, %v802_v36  ;;  %v1206_v40 = vpop.f32.mrb[5].mxu0 }
 0x328   :  { %v1854_v41 = vadd.f32 %v1206_v40, %v806_v37  ;;  %v1208_v42 = vpop.f32.mrb[6].mxu0 }
 0x329   :  { %v1211_v43 = vmax.f32 %v1853_v39, 0.0  ;;  %v1209_v44 = vpop.f32.mrb[7].mxu0 }
 0x32a   :  { %v1212_v45 = vmax.f32 %v1854_v41, 0.0 }
 0x32b   :  { %v1213_v48 = vpack.c.bf16 %v1211_v43, %v1211_v43 }
 0x32c   :  { %v1214_v46 = vpack.c.bf16 %v1212_v45, %v1212_v45 }
 0x32e   :  { %1451 = vmatprep.mubr.bf16.mxu1 %v1214_v46 }
 0x32f   :  { %1452 = vmatmul.mubr.bf16.vlgmr.msra.gmra.mrb[12].mxu1 %v1213_v48 }
 0x330   :  { %1832 = vmatpush3.bf16.msra.mxu1 %v2116_v47 }
 0x331   :  { %1833 = vmatprep.subr.bf16.mxu1 %v2117_v49 }
 0x334   :  { %1834 = vmatpush3.bf16.msra.mxu1 %v2118_v50 }
 0x335   :  { %1835 = vmatprep.subr.bf16.mxu1 %v2119_v51 }
 0x338   :  { %1836 = vmatpush3.bf16.msra.mxu1 %v2120_v52 }
 0x339   :  { %1837 = vmatprep.subr.bf16.mxu1 %v2121_v53 }
 0x33c   :  { %1838 = vmatpush3.bf16.msra.mxu1 %v2122_v54 }
 0x33d   :  { %1839 = vmatprep.subr.bf16.mxu1 %v2123_v55 }
 0x340   :  { %1840 = vmatpush3.bf16.msra.mxu1 %v2124_v56 }
 0x341   :  { %1841 = vmatprep.subr.bf16.mxu1 %v2125_v57 }
 0x344   :  { %1842 = vmatpush3.bf16.msra.mxu1 %v2126_v58 }
 0x345   :  { %1843 = vmatprep.subr.bf16.mxu1 %v2127_v59 }
 0x348   :  { %1844 = vmatpush3.bf16.msra.mxu1 %v2128_v60 }
 0x349   :  { %1845 = vmatprep.subr.bf16.mxu1 %v2129_v61 }
 0x34c   :  { %1846 = vmatpush3.bf16.msra.mxu1 %v2130_v62 }
 0x402   :  { %v1453_v2 = vpop.f32.mrb[12].mxu1 }
 0x403   :  { %v1454_v3 = vadd.f32 %v1453_v2, %v1252_v0  ;;  %v1455_v4 = vpop.f32.mrb[13].mxu1 }
 0x404   :  { %v1456_v5 = vadd.f32 %v1455_v4, %v1256_v1  ;;  %v1457_v6 = vpop.f32.mrb[14].mxu1 }
 0x405   :  { %v1460_v7 = vmax.f32 %v1454_v3, 0.0  ;;  %v1458_v8 = vpop.f32.mrb[15].mxu1 }
 0x406   :  { %v1461_v9 = vmax.f32 %v1456_v5, 0.0 }
 0x407   :  { %v1462_v11 = vpack.c.bf16 %v1460_v7, %v1460_v7 }
 0x408   :  { %v1463_v10 = vpack.c.bf16 %v1461_v9, %v1461_v9 }
 0x40a   :  { %1631 = vmatprep.mubr.bf16.mxu1 %v1463_v10 }
 0x40b   :  { %1632 = vmatmul.mubr.bf16.vlgmr.msra.gmra.mrb[16].mxu1 %v1462_v11 }
 0x4de   :  { %v1847_v12 = vpop.f32.mrb[16].mxu1 }
 0x4df   :  { %v1848_v18 = vpop.f32.mrb[17].mxu1 }
 0x4e0   :  { %v1849_v15 = vadd.f32 %v1848_v18, %v1847_v12  ;;  %v1850_v20 = vpop.f32.mrb[18].mxu1 }
 0x4e1   :  { %v1851_v16 = vpop.f32.mrb[19].mxu1 }
 0x4e2   :  { %v1634_v17 = vadd.f32 %v1849_v15, %v1814_v14 }
 0x4e4   :  { %1639 = vst [vmem:[%s2440_s13] sm:$0xff] %v1634_v17 }
 0x4e5   :  { %1644 = vsyncpa [#allocation3], 1 }
 0x4e6   :  { %1645 = vsyncpa [#allocation5], 1 }
 0x4e7   :  { %1646 = vsyncpa [#allocation8], 1 }

</bundles_post_ra>
